<compile_context>
chip_gen: v6e
topology: v6e:2x2x1
jax: 0.10.0
libtpu: 0.0.40
codegen_flags: <defaults>
</compile_context>

<pallas_src>
import functools

import numpy as np
import jax
import jax.numpy as jnp
from jax.experimental import pallas as pl
from jax.experimental.pallas import tpu as pltpu


# ----------------------------- helpers ------------------------------------

def _gauss1d(win_size: int, sigma: float) -> np.ndarray:
    """PyTorch-msssim `_fspecial_gauss_1d` (normalized 1-D Gaussian)."""
    coords = np.arange(win_size, dtype=np.float64) - win_size // 2
    g = np.exp(-(coords ** 2) / (2.0 * sigma ** 2))
    g = g / g.sum()
    return g.astype(np.float32)


# ----------------------------- Pallas kernel -------------------------------

def _ssim_plane_kernel(x_ref, y_ref, fh_ref, fwb_ref, out_ref, *,
                       c1, c2, w_out, convert_range):
    """Per-(n,c) plane SSIM mean.

    x_ref, y_ref : (1, H, W)      one image plane each
    fh_ref       : (Hout, H)      banded Gaussian filter, H direction
    fwb_ref      : (5W, 5*Wout)   block-diag banded Gaussian filter, W direction
    out_ref      : (1, 1, 128)    per-plane SSIM mean, lane-broadcast
    """
    xp = x_ref[0]                              # (H, W) f32
    yp = y_ref[0]
    if convert_range:                          # [-1,1] -> [0,1]
        xp = (xp + 1.0) * 0.5
        yp = (yp + 1.0) * 0.5

    # Stack the 5 quantities on the lane axis: (H, 5*W).
    stack = jnp.concatenate([xp, yp, xp * xp, yp * yp, xp * yp], axis=1)

    # Separable Gaussian "valid" filter == two MXU matmuls for all 5 at once.
    t = jnp.dot(fh_ref[...], stack, preferred_element_type=jnp.float32)   # (Hout, 5W)
    f = jnp.dot(t, fwb_ref[...], preferred_element_type=jnp.float32)      # (Hout, 5*Wout)

    mu1 = f[:, 0 * w_out:1 * w_out]
    mu2 = f[:, 1 * w_out:2 * w_out]
    exx = f[:, 2 * w_out:3 * w_out]
    eyy = f[:, 3 * w_out:4 * w_out]
    exy = f[:, 4 * w_out:5 * w_out]

    mu1_sq = mu1 * mu1
    mu2_sq = mu2 * mu2
    mu1_mu2 = mu1 * mu2
    sigma1_sq = exx - mu1_sq                   # same formula as pytorch_msssim
    sigma2_sq = eyy - mu2_sq
    sigma12 = exy - mu1_mu2

    cs_map = (2.0 * sigma12 + c2) / (sigma1_sq + sigma2_sq + c2)
    ssim_map = ((2.0 * mu1_mu2 + c1) / (mu1_sq + mu2_sq + c1)) * cs_map

    n_valid = ssim_map.shape[0] * ssim_map.shape[1]
    mean = jnp.sum(ssim_map) * (1.0 / n_valid)
    out_ref[...] = jnp.full(out_ref.shape, mean, dtype=out_ref.dtype)


# ----------------------------- public wrapper ------------------------------

def ssim_loss(x, y, *, data_range=255.0, win_size=11, win_sigma=1.5,
              K=(0.01, 0.03), convert_range=False, size_average=True,
              nonnegative_ssim=False):
    """`SSIMLoss(convert_range=...)(x, y)` = 1 - SSIM(x, y).  x, y: (N,C,H,W)."""
    x = jnp.asarray(x, jnp.float32)
    y = jnp.asarray(y, jnp.float32)
    assert x.shape == y.shape and x.ndim == 4, "expected matching NCHW inputs"
    N, C, H, W = x.shape
    assert win_size % 2 == 1, "win_size should be odd"
    assert H >= win_size and W >= win_size, \
        "kernel supports H, W >= win_size (no skipped-dim path)"
    h_out = H - win_size + 1
    w_out = W - win_size + 1

    g = _gauss1d(win_size, float(win_sigma))
    # Fh @ img        -> valid Gaussian filter along H:  Fh[i, i+k] = g[k]
    fh = np.zeros((h_out, H), np.float32)
    for i in range(h_out):
        fh[i, i:i + win_size] = g
    # img @ Fw        -> valid Gaussian filter along W:  Fw[j+k, j] = g[k]
    fw = np.zeros((W, w_out), np.float32)
    for j in range(w_out):
        fw[j:j + win_size, j] = g
    # Block-diagonal Fw so one matmul filters all 5 stacked quantities.
    # (For very large W, switch to per-quantity Fw matmuls instead.)
    fwb = np.zeros((5 * W, 5 * w_out), np.float32)
    for q in range(5):
        fwb[q * W:(q + 1) * W, q * w_out:(q + 1) * w_out] = fw

    c1 = (float(K[0]) * float(data_range)) ** 2
    c2 = (float(K[1]) * float(data_range)) ** 2

    nc = N * C
    xp = x.reshape(nc, H, W)
    yp = y.reshape(nc, H, W)

    kernel = functools.partial(_ssim_plane_kernel, c1=c1, c2=c2,
                               w_out=w_out, convert_range=bool(convert_range))

    per_plane = pl.pallas_call(
        kernel,
        out_shape=jax.ShapeDtypeStruct((nc, 1, 128), jnp.float32),
        grid=(nc,),
        in_specs=[
            pl.BlockSpec((1, H, W), lambda i: (i, 0, 0)),
            pl.BlockSpec((1, H, W), lambda i: (i, 0, 0)),
            pl.BlockSpec((h_out, H), lambda i: (0, 0)),
            pl.BlockSpec((5 * W, 5 * w_out), lambda i: (0, 0)),
        ],
        out_specs=pl.BlockSpec((1, 1, 128), lambda i: (i, 0, 0)),
        compiler_params=pltpu.CompilerParams(
            dimension_semantics=("parallel",)),
    )(xp, yp, jnp.asarray(fh), jnp.asarray(fwb))

    ssim_per_channel = per_plane[:, 0, 0].reshape(N, C)
    if nonnegative_ssim:
        ssim_per_channel = jnp.maximum(ssim_per_channel, 0.0)
    if size_average:
        ssim_val = jnp.mean(ssim_per_channel)
    else:
        ssim_val = jnp.mean(ssim_per_channel, axis=1)
    return 1.0 - ssim_val


# ----------------------- pure-JAX reference (correctness) ------------------

def ssim_loss_reference(x, y, *, data_range=255.0, win_size=11, win_sigma=1.5,
                        K=(0.01, 0.03), convert_range=False, size_average=True,
                        nonnegative_ssim=False):
    x = jnp.asarray(x, jnp.float32)
    y = jnp.asarray(y, jnp.float32)
    if convert_range:
        x = (x + 1.0) / 2.0
        y = (y + 1.0) / 2.0
    N, C, H, W = x.shape
    g = jnp.asarray(_gauss1d(win_size, float(win_sigma)))
    wh = jnp.tile(g.reshape(1, 1, win_size, 1), (C, 1, 1, 1))
    ww = jnp.tile(g.reshape(1, 1, 1, win_size), (C, 1, 1, 1))
    dn = ('NCHW', 'OIHW', 'NCHW')

    def gfilter(t):
        t = jax.lax.conv_general_dilated(t, wh, (1, 1), 'VALID',
                                         dimension_numbers=dn,
                                         feature_group_count=C,
                                         precision=jax.lax.Precision.HIGHEST)
        t = jax.lax.conv_general_dilated(t, ww, (1, 1), 'VALID',
                                         dimension_numbers=dn,
                                         feature_group_count=C,
                                         precision=jax.lax.Precision.HIGHEST)
        return t

    c1 = (float(K[0]) * float(data_range)) ** 2
    c2 = (float(K[1]) * float(data_range)) ** 2
    mu1, mu2 = gfilter(x), gfilter(y)
    mu1_sq, mu2_sq, mu1_mu2 = mu1 * mu1, mu2 * mu2, mu1 * mu2
    sigma1_sq = gfilter(x * x) - mu1_sq
    sigma2_sq = gfilter(y * y) - mu2_sq
    sigma12 = gfilter(x * y) - mu1_mu2
    cs_map = (2 * sigma12 + c2) / (sigma1_sq + sigma2_sq + c2)
    ssim_map = ((2 * mu1_mu2 + c1) / (mu1_sq + mu2_sq + c1)) * cs_map
    ssim_per_channel = ssim_map.reshape(N, C, -1).mean(-1)
    if nonnegative_ssim:
        ssim_per_channel = jnp.maximum(ssim_per_channel, 0.0)
    ssim_val = ssim_per_channel.mean() if size_average else ssim_per_channel.mean(1)
    return 1.0 - ssim_val


# ------------------------------------ main ---------------------------------

if __name__ == "__main__":
    key = jax.random.PRNGKey(0)
    k1, k2, k3, k4 = jax.random.split(key, 4)

    # Config 1: module defaults (convert_range=False, data_range=255).
    x1 = jax.random.uniform(k1, (2, 3, 16, 16), jnp.float32, 0.0, 255.0)
    y1 = jnp.clip(x1 + 20.0 * jax.random.normal(k2, x1.shape, jnp.float32),
                  0.0, 255.0)
    out1 = jax.block_until_ready(ssim_loss(x1, y1))
    ref1 = jax.block_until_ready(ssim_loss_reference(x1, y1))
    assert out1.shape == ()
    np.testing.assert_allclose(np.asarray(out1), np.asarray(ref1),
                               rtol=1e-3, atol=1e-3)

    # Config 2: convert_range=True with [-1, 1] inputs and data_range=1.0.
    x2 = jax.random.uniform(k3, (2, 3, 16, 16), jnp.float32, -1.0, 1.0)
    y2 = jnp.clip(x2 + 0.3 * jax.random.normal(k4, x2.shape, jnp.float32),
                  -1.0, 1.0)
    out2 = jax.block_until_ready(
        ssim_loss(x2, y2, convert_range=True, data_range=1.0))
    ref2 = jax.block_until_ready(
        ssim_loss_reference(x2, y2, convert_range=True, data_range=1.0))
    np.testing.assert_allclose(np.asarray(out2), np.asarray(ref2),
                               rtol=1e-3, atol=1e-3)

    print("KERNEL_OK")
</pallas_src>

<mosaic_0001>
module attributes {stable_mosaic.version = 11 : i64} {
  func.func @_ssim_plane_kernel(%arg0: i32, %arg1: memref<1x16x16xf32, #tpu.memory_space<vmem>>, %arg2: memref<1x16x16xf32, #tpu.memory_space<vmem>>, %arg3: memref<6x16xf32, #tpu.memory_space<vmem>>, %arg4: memref<80x30xf32, #tpu.memory_space<vmem>>, %arg5: memref<1x1x128xf32, #tpu.memory_space<vmem>>) attributes {dimension_semantics = [#tpu.dimension_semantics<parallel>], iteration_bounds = array<i64: 6>, scalar_prefetch = 0 : i64, scratch_operands = 0 : i64, tpu.core_type = #tpu.core_type<tc>, window_params = [{transform_indices = @transform_0, window_bounds = array<i64: 1, 16, 16>}, {transform_indices = @transform_1, window_bounds = array<i64: 1, 16, 16>}, {pipeline_mode = #tpu.pipeline_mode<synchronous>, transform_indices = @transform_2, window_bounds = array<i64: 6, 16>}, {pipeline_mode = #tpu.pipeline_mode<synchronous>, transform_indices = @transform_3, window_bounds = array<i64: 80, 30>}, {transform_indices = @transform_4, window_bounds = array<i64: 1, 1, 128>}]} {
    %c0 = arith.constant 0 : index
    %c0_0 = arith.constant 0 : index
    %c0_1 = arith.constant 0 : index
    %0 = vector.load %arg1[%c0, %c0_0, %c0_1] : memref<1x16x16xf32, #tpu.memory_space<vmem>>, vector<1x16x16xf32>
    %1 = vector.shape_cast %0 : vector<1x16x16xf32> to vector<16x16xf32>
    %c0_2 = arith.constant 0 : index
    %c0_3 = arith.constant 0 : index
    %c0_4 = arith.constant 0 : index
    %2 = vector.load %arg2[%c0_2, %c0_3, %c0_4] : memref<1x16x16xf32, #tpu.memory_space<vmem>>, vector<1x16x16xf32>
    %3 = vector.shape_cast %2 : vector<1x16x16xf32> to vector<16x16xf32>
    %4 = arith.mulf %1, %1 : vector<16x16xf32>
    %5 = arith.mulf %3, %3 : vector<16x16xf32>
    %6 = arith.mulf %1, %3 : vector<16x16xf32>
    %7 = tpu.concatenate %1, %3, %4, %5, %6 in 1 : vector<16x16xf32>, vector<16x16xf32>, vector<16x16xf32>, vector<16x16xf32>, vector<16x16xf32> -> vector<16x80xf32>
    %c0_5 = arith.constant 0 : index
    %c0_6 = arith.constant 0 : index
    %8 = vector.load %arg3[%c0_5, %c0_6] : memref<6x16xf32, #tpu.memory_space<vmem>>, vector<6x16xf32>
    %cst = arith.constant dense<0.000000e+00> : vector<6x80xf32>
    %9 = tpu.matmul %8, %7, %cst {dimension_numbers = #tpu.dot_dimension_numbers<[1], [0], [0], [1], [0, 0, 1, 1], [], []>} : vector<6x16xf32>, vector<16x80xf32>, vector<6x80xf32> -> vector<6x80xf32>
    %c0_7 = arith.constant 0 : index
    %c0_8 = arith.constant 0 : index
    %10 = vector.load %arg4[%c0_7, %c0_8] : memref<80x30xf32, #tpu.memory_space<vmem>>, vector<80x30xf32>
    %cst_9 = arith.constant dense<0.000000e+00> : vector<6x30xf32>
    %11 = tpu.matmul %9, %10, %cst_9 {dimension_numbers = #tpu.dot_dimension_numbers<[1], [0], [0], [1], [0, 0, 1, 1], [], []>} : vector<6x80xf32>, vector<80x30xf32>, vector<6x30xf32> -> vector<6x30xf32>
    %12 = vector.extract_strided_slice %11 {offsets = [0, 0], sizes = [6, 6], strides = [1, 1]} : vector<6x30xf32> to vector<6x6xf32>
    %13 = vector.extract_strided_slice %11 {offsets = [0, 6], sizes = [6, 6], strides = [1, 1]} : vector<6x30xf32> to vector<6x6xf32>
    %14 = vector.extract_strided_slice %11 {offsets = [0, 12], sizes = [6, 6], strides = [1, 1]} : vector<6x30xf32> to vector<6x6xf32>
    %15 = vector.extract_strided_slice %11 {offsets = [0, 18], sizes = [6, 6], strides = [1, 1]} : vector<6x30xf32> to vector<6x6xf32>
    %16 = vector.extract_strided_slice %11 {offsets = [0, 24], sizes = [6, 6], strides = [1, 1]} : vector<6x30xf32> to vector<6x6xf32>
    %17 = arith.mulf %12, %12 : vector<6x6xf32>
    %18 = arith.mulf %13, %13 : vector<6x6xf32>
    %19 = arith.mulf %12, %13 : vector<6x6xf32>
    %20 = arith.subf %14, %17 : vector<6x6xf32>
    %21 = arith.subf %15, %18 : vector<6x6xf32>
    %22 = arith.subf %16, %19 : vector<6x6xf32>
    %cst_10 = arith.constant 2.000000e+00 : f32
    %23 = vector.broadcast %cst_10 : f32 to vector<6x6xf32>
    %24 = arith.mulf %23, %22 : vector<6x6xf32>
    %cst_11 = arith.constant 5.852250e+01 : f32
    %25 = vector.broadcast %cst_11 : f32 to vector<6x6xf32>
    %26 = arith.addf %24, %25 : vector<6x6xf32>
    %27 = arith.addf %20, %21 : vector<6x6xf32>
    %cst_12 = arith.constant 5.852250e+01 : f32
    %28 = vector.broadcast %cst_12 : f32 to vector<6x6xf32>
    %29 = arith.addf %27, %28 : vector<6x6xf32>
    %30 = arith.divf %26, %29 : vector<6x6xf32>
    %cst_13 = arith.constant 2.000000e+00 : f32
    %31 = vector.broadcast %cst_13 : f32 to vector<6x6xf32>
    %32 = arith.mulf %31, %19 : vector<6x6xf32>
    %cst_14 = arith.constant 6.502500e+00 : f32
    %33 = vector.broadcast %cst_14 : f32 to vector<6x6xf32>
    %34 = arith.addf %32, %33 : vector<6x6xf32>
    %35 = arith.addf %17, %18 : vector<6x6xf32>
    %cst_15 = arith.constant 6.502500e+00 : f32
    %36 = vector.broadcast %cst_15 : f32 to vector<6x6xf32>
    %37 = arith.addf %35, %36 : vector<6x6xf32>
    %38 = arith.divf %34, %37 : vector<6x6xf32>
    %39 = arith.mulf %38, %30 : vector<6x6xf32>
    %40 = vector.shape_cast %39 : vector<6x6xf32> to vector<1x6x6xf32>
    %cst_16 = arith.constant dense<0.000000e+00> : vector<1xf32>
    %41 = vector.multi_reduction <add>, %40, %cst_16 [1, 2] : vector<1x6x6xf32> to vector<1xf32>
    %42 = vector.shape_cast %41 : vector<1xf32> to vector<1x1x1xf32>
    %43 = vector.extract %42[0, 0, 0] : f32 from vector<1x1x1xf32>
    %cst_17 = arith.constant 0.027777778 : f32
    %44 = arith.mulf %43, %cst_17 : f32
    %45 = vector.broadcast %44 : f32 to vector<1x1x128xf32>
    %c0_18 = arith.constant 0 : index
    %c0_19 = arith.constant 0 : index
    %c0_20 = arith.constant 0 : index
    %46 = vector.load %arg5[%c0_18, %c0_19, %c0_20] : memref<1x1x128xf32, #tpu.memory_space<vmem>>, vector<1x1x128xf32>
    tpu.vector_store %arg5[%c0_18, %c0_19, %c0_20], %45 {strides = array<i32>} : memref<1x1x128xf32, #tpu.memory_space<vmem>>, vector<1x1x128xf32>,
    return
  }
  func.func @transform_0(%arg0: i32) -> (i32, i32, i32) {
    %c0_i32 = arith.constant 0 : i32
    %c0_i32_0 = arith.constant 0 : i32
    %c0_i32_1 = arith.constant 0 : i32
    return %arg0, %c0_i32, %c0_i32_0 : i32, i32, i32
  }
  func.func @transform_1(%arg0: i32) -> (i32, i32, i32) {
    %c0_i32 = arith.constant 0 : i32
    %c0_i32_0 = arith.constant 0 : i32
    %c0_i32_1 = arith.constant 0 : i32
    return %arg0, %c0_i32, %c0_i32_0 : i32, i32, i32
  }
  func.func @transform_2(%arg0: i32) -> (i32, i32) {
    %c0_i32 = arith.constant 0 : i32
    %c0_i32_0 = arith.constant 0 : i32
    %c0_i32_1 = arith.constant 0 : i32
    return %c0_i32, %c0_i32_0 : i32, i32
  }
  func.func @transform_3(%arg0: i32) -> (i32, i32) {
    %c0_i32 = arith.constant 0 : i32
    %c0_i32_0 = arith.constant 0 : i32
    %c0_i32_1 = arith.constant 0 : i32
    return %c0_i32, %c0_i32_0 : i32, i32
  }
  func.func @transform_4(%arg0: i32) -> (i32, i32, i32) {
    %c0_i32 = arith.constant 0 : i32
    %c0_i32_0 = arith.constant 0 : i32
    %c0_i32_1 = arith.constant 0 : i32
    return %arg0, %c0_i32, %c0_i32_0 : i32, i32, i32
  }
}

</mosaic_0001>

<bundles_post_ra>
// kernel: tpu_custom_call.1
= control target key start
LH: loop header
LB: loop body
LE: loop exit
PB: predicated region body
PF: predicated region fallthrough
CT: control target
= control target key end

     0   :  { %9 = vsyncpa [#allocation3], 0  ;;  %s1054_s0 = inlined_call_operand.vmem [shape: f32[6,16,16], index: 0, kind: input, shape index: {}]   ;;  %s1055_s1 = inlined_call_operand.hbm [shape: f32[6,16,16], index: 1, kind: input, shape index: {}]   ;;  %s1056_s2 = inlined_call_operand.vmem [shape: f32[6,16], index: 2, kind: input, shape index: {}]   ;;  %s1057_s3 = inlined_call_operand.vmem [shape: f32[80,30], index: 3, kind: input, shape index: {}]   ;;  %s1058_s4 = inlined_call_operand.hbm [shape: f32[6,1,128], index: 4, kind: output, shape index: {}]  }
   0x1   :  { %11 = vsyncpa [#allocation3 + $0x1], 0 }
   0x2   :  { %12 = vsyncpa [#allocation4], 0 }
   0x3   :  { %14 = vsyncpa [#allocation4 + $0x1], 0  ;;  %s854_s15 = smov 0   ;;  %s856_s16 = smov 0  }
   0x4   :  { %s858_s17 = smov 0   ;;  %s860_s18 = smov 0  }
   0x5 LB: > { %s875_s19 = sadd.s32 4294967295, %s813_s18   ;;  %s596_s20 = sadd.s32 4294967294, %s813_s18   ;;  %s813_s18 = sphi %s860_s18, %s1072_s18   ;;  %s809_s17 = sphi %s858_s17, %s1071_s17   ;;  %s805_s16 = sphi %s856_s16, %s1070_s16   ;;  %s801_s15 = sphi %s854_s15, %s1069_s15  }
   0x6   : > { %s879_s21 = sadd.s32 1, %s813_s18   ;;  %s53_s22 = sadd.s32 1, %s809_s17 }
   0x7   : > { %s50_s23 = ssub.s32 %s813_s18, %s879_s21  ;;  %p60_p0 = scmp.ne.s32.totalorder %s809_s17, %s805_s16 }
   0x8   : > { %p51_p1 = scmp.eq.s32.totalorder %s50_s23, 0  ;;  %p61_p2 = scmp.eq.s32.totalorder %s813_s18, 0 }
   0x9   : > { %p66_p3 = scmp.ne.s32.totalorder %s805_s16, %s801_s15  ;;  %p67_p4 = scmp.eq.s32.totalorder %s875_s19, 0 }
   0xa   : > { %s891_s24 = scalar_select %p51_p1, %s809_s17, %s53_s22  }
   0xb   : > { %p893_p5 = por %p61_p2, %p60_p0  ;;  %p897_p6 = por %p67_p4, %p66_p3 }
   0xc   : > { %p132_p7 = scmp.eq.s32.totalorder %s875_s19, 5  ;;  %p138_p8 = scmp.eq.s32.totalorder %s596_s20, 5 }
   0xd   : > { %s1062_s26 = scalar_select %p897_p6, 1, 0 }
   0xe   : > { %p671_p9 = scmp.lt.s32.totalorder %s813_s18, 6  ;;  %p903_p10 = por %p132_p7, %p60_p0 }
   0xf   : > { %p907_p11 = por %p138_p8, %p66_p3  ;;  %s172_s29 = sand.u32 1, %s809_s17  }
  0x10   : > { %s1063_s27 = scalar_select %p903_p10, 1, 0 }
  0x11   : > { %s1064_s28 = scalar_select %p907_p11, 1, 0 }
  0x12   : > { %s611_s30 = sshll.u32 %s813_s18, 8  ;;  %s599_s5 = sshll.u32 %s172_s29, 4 }
  0x13   : > { %s916_s8 = scalar_lea.hbm %s1055_s1, %s611_s30  ;;  %s176_s9 = scalar_lea.vmem [#allocation2], %s599_s5 }
  0x14   : > { %s183_s10 = sshll.u32 %s176_s9, 4  ;;  %p920_p12 = pnand %p671_p9, %p893_p5  ;;  %s924_s10 = int_to_ptr.vmem [resolvable:$true] %s183_s10 }
  0x15   : > { %s926_s12 = scalar_lea.sflag [#allocation3], %s172_s29  ;;  %s721_s13 = scalar_lea.hbm %s916_s8, 256 }
  0x16   : > { %p722_p13 = scmp.ne.s32.totalorder %s916_s8, %s721_s13  ;;  %p723_p0 = pneg %p920_p12 }
  0x17   : > { %s726_s22 = scalar_lea.hbm %s1055_s1, 1536  ;;  %p727_p3 = scmp.lt.s32.totalorder %s916_s8, %s1055_s1 }
  0x18   : > { %p724_p1 = pnand %p723_p0, %p722_p13  ;;  %p728_p4 = scmp.lt.s32.totalorder %s726_s22, %s721_s13 }
  0x1a   : > { %p725_p2 = pneg %p724_p1  ;;  %p729_p5 = por %p728_p4, %p727_p3 }
  0x1c   : > { %p730_p7 = pnand %p729_p5, %p725_p2 }
  0x1e   : > { %733 = shalt.err (!%p730_p7)
}
  0x1f   : > { %s734_s29 = scalar_lea.vmem %s924_s10, 256  ;;  %s815_s30 = smov [#allocation2]  }
  0x20   : > { %p735_p8 = scmp.ne.s32.totalorder %s924_s10, %s734_s29  ;;  %s739_s5 = sshll.u32 %s815_s30, 4  ;;  %s740_s5 = int_to_ptr.vmem [resolvable:$false] %s739_s5 }
  0x21   : > { %s741_s6 = scalar_lea.vmem %s740_s5, 512  ;;  %p742_p1 = scmp.lt.s32.totalorder %s924_s10, %s740_s5 }
  0x22   : > { %p737_p9 = pnand %p735_p8, %p723_p0  ;;  %p743_p11 = scmp.lt.s32.totalorder %s741_s6, %s734_s29 }
  0x24   : > { %p738_p13 = pneg %p737_p9  ;;  %p744_p10 = por %p743_p11, %p742_p1 }
  0x26   : > { %p745_p6 = pnand %p744_p10, %p738_p13 }
  0x28   : > { %748 = shalt.err (!%p745_p6)
}
  0x29   : > { %s816_s7 = smov 128   ;;  %s817_s9 = smov 8  }
  0x2a   : > { %666 = dma.hbm_to_vmem [thread:$0]  (!%p920_p12), %s916_s8, 256, %s924_s10, %s926_s12, %s816_s7, %s816_s7, %s817_s9  }
  0x2b   : > { %p602_p0 = scmp.ge.s32.totalorder %s813_s18, 1  ;;  %p191_p2 = scmp.lt.s32.totalorder %s813_s18, 7 }
  0x2d   : > { %p192_p3 = pnand %p602_p0, %p191_p2 }
  0x2e   : > { %s950_s13 = sand.u32 (!%p192_p3), 1, %s805_s16   ;;  %p1066_p6 = scmp.ne.s32.totalorder (!%p192_p3), %s1062_s26, 0 }
  0x2f   : > { %195 = sbr.rel (%p192_p3) target bundleno = 1277 (0x4fd), region = 36  ;;  %s603_s14 = sshll.u32 (!%p192_p3), %s950_s13, 4 }
  0x30   : > { %s198_s20 = scalar_lea.sflag (!%p192_p3), [#allocation3], %s950_s13  ;;  %s201_s22 = scalar_lea.vmem (!%p192_p3), [#allocation2], %s603_s14 }
  0x34   : > { %792 = dma.done.wait (%p1066_p6), %s198_s20, 256  }
  0x35   : > { %794 = vsyncadd (%p1066_p6), %s198_s20, 4294967040  ;;  %p230_p10 = scmp.lt.s32.totalorder %s875_s19, 5  ;;  %v818_v0 = vmov 0.0   ;;  %v238_v1 = vld [vmem:[%s201_s22 + $0x8] sm:$0xff]  ;;  %v237_v2 = vld [vmem:[%s201_s22] sm:$0xff]  ;;  %s819_s25 = smov 16  }
  0x36   : > { %627 = vmatprep.subr.mxu0 %v818_v0  ;;  %634 = vmatprep.subr.mxu1 %v818_v0  ;;  %v242_v4 = vmul.f32 %v238_v1, %v238_v1  ;;  %vm820_vm0 = vmmov 0   ;;  %v372_v7 = vld [vmem:[%s1057_s3 + $0x48] sm:$0xff]  ;;  %v371_v8 = vld [vmem:[%s1057_s3 + $0x40] sm:$0xff]  ;;  %s821_s6 = smov 48   ;;  %s822_s7 = smov 32   ;;  %v370_v11 = vld [vmem:[%s1057_s3 + $0x38] sm:$0xff]  ;;  %v241_v12 = vmul.f32 %v237_v2, %v237_v2 }
  0x37   : > { %s231_s8 = scalar_select %p230_p10, %s875_s19, 5  ;;  %249 = vrot.lane.b32.xlu0 %v238_v1, %s819_s25  ;;  %247 = vrot.lane.b32.xlu1 %v237_v2, %s819_s25  ;;  %v369_v14 = vld [vmem:[%s1057_s3 + $0x30] sm:$0xff]  ;;  %v368_v15 = vld [vmem:[%s1057_s3 + $0x28] sm:$0xff]  ;;  %vm277_vm1 = vcmask 130048   ;;  %vm280_vm2 = vcmask 261120   ;;  %vm283_vm3 = vcmask 392192  }
  0x38   : > { %631 = vmatprep.mubr.msk.f32.mxu0 %vm820_vm0, %v818_v0  ;;  %654 = vmatprep.mubr.msk.f32.mxu1 %vm820_vm0, %v818_v0  ;;  %s823_s20 = smov 64   ;;  %v367_v16 = vld [vmem:[%s1057_s3 + $0x20] sm:$0xff]  ;;  %v366_v17 = vld [vmem:[%s1057_s3 + $0x18] sm:$0xff]  ;;  %v365_v18 = vld [vmem:[%s1057_s3 + $0x10] sm:$0xff]  ;;  %vm286_vm4 = vcmask 523264   ;;  %vm373_vm5 = vcmask 654336  }
  0x39   : > { %s612_s10 = sshll.u32 %s231_s8, 4  ;;  %635 = vmatpush3.msra.mxu1 %v372_v7  ;;  %v364_v19 = vld [vmem:[%s1057_s3 + $0x8] sm:$0xff]  ;;  %v289_v35 = vld [vmem:[%s1056_s2] sm:$0x3f]  ;;  %s824_s22 = smov 12   ;;  %vm491_vm6 = vcmask 46080  }
  0x3a   : > { %s234_s23 = scalar_lea.vmem %s1054_s0, %s612_s10  ;;  %636 = vmatprep.subr.mxu1 %v818_v0  ;;  %v363_v37 = vld [vmem:[%s1057_s3] sm:$0xff]  ;;  %s825_s8 = smov 122  }
  0x3b   : > { %v236_v3 = vld [vmem:[%s234_s23 + $0x8] sm:$0xff]  ;;  %v235_v6 = vld [vmem:[%s234_s23] sm:$0xff]  ;;  %265 = vrot.lane.b32.xlu1 %v242_v4, %s821_s6  ;;  %637 = vmatpush3.msra.mxu1 %v371_v8  ;;  %s826_s10 = smov 24   ;;  %s827_s11 = smov 104  }
  0x3c   : > { %v240_v5 = vmul.f32 %v236_v3, %v236_v3  ;;  %v244_v9 = vmul.f32 %v238_v1, %v236_v3  ;;  %v239_v10 = vmul.f32 %v235_v6, %v235_v6  ;;  %638 = vmatprep.subr.mxu1 %v818_v0  ;;  %v243_v13 = vmul.f32 %v237_v2, %v235_v6  ;;  %s229_s12 = scalar_lea.vmem [#allocation5], %s950_s13  ;;  %s608_s25 = sshll.u32 %s875_s19, 4 }
  0x3d   : > { %639 = vmatpush3.msra.mxu1 %v370_v11  ;;  %s518_s23 = sshll.u32 %s229_s12, 4  ;;  %p1067_p12 = scmp.ne.s32.totalorder %s1063_s27, 0  ;;  %s519_s23 = int_to_ptr.vmem [resolvable:$true] %s518_s23 }
  0x3e   : > { %257 = vrot.lane.b32.xlu0 %v240_v5, %s822_s7  ;;  %640 = vmatprep.subr.mxu1 %v818_v0  ;;  %s749_s9 = scalar_lea.vmem %s519_s23, 16  ;;  %s828_s14 = smov [#allocation5]  }
  0x3f   : > { %273 = vrot.lane.b32.xlu1 %v244_v9, %s823_s20  ;;  %641 = vmatpush3.msra.mxu1 %v369_v14  ;;  %p750_p11 = scmp.ne.s32.totalorder %s519_s23, %s749_s9 }
  0x40   : > { %642 = vmatprep.subr.mxu1 %v818_v0 }
  0x41   : > { %643 = vmatpush3.msra.mxu1 %v368_v15  ;;  %p751_p4 = pnand %p750_p11, %p1067_p12 }
  0x42   : > { %255 = vrot.lane.b32.xlu0 %v239_v10, %s822_s7  ;;  %644 = vmatprep.subr.mxu1 %v818_v0  ;;  %s506_s7 = scalar_lea.sflag [#allocation4], %s950_s13 }
  0x43   : > { %271 = vrot.lane.b32.xlu1 %v243_v13, %s823_s20  ;;  %645 = vmatpush3.msra.mxu1 %v367_v16  ;;  %p752_p5 = pneg %p751_p4  ;;  %s753_s20 = sshll.u32 %s828_s14, 4  ;;  %s754_s20 = int_to_ptr.vmem [resolvable:$false] %s753_s20 }
  0x44   : > { %646 = vmatprep.subr.mxu1 %v818_v0  ;;  %s755_s19 = scalar_lea.vmem %s754_s20, 32  ;;  %p756_p7 = scmp.lt.s32.totalorder %s519_s23, %s754_s20 }
  0x45   : > { %647 = vmatpush3.msra.mxu1 %v366_v17  ;;  %p757_p8 = scmp.lt.s32.totalorder %s755_s19, %s749_s9 }
  0x46   : > { %263 = vrot.lane.b32.xlu0 %v241_v12, %s821_s6  ;;  %648 = vmatprep.subr.mxu1 %v818_v0  ;;  %s1018_s6 = scalar_lea.hbm %s1058_s4, %s608_s25 }
  0x47   : > { %649 = vmatpush3.msra.mxu1 %v365_v18  ;;  %p758_p9 = por %p757_p8, %p756_p7 }
  0x48   : > { %650 = vmatprep.subr.mxu1 %v818_v0 }
  0x49   : > { %651 = vmatpush3.msra.mxu1 %v364_v19  ;;  %p759_p13 = pnand %p758_p9, %p752_p5 }
  0x4a   : > { %652 = vmatprep.subr.mxu1 %v818_v0 }
  0x4b   : > { %653 = vmatpush3.msra.mxu1 %v363_v37 }
  0xa9   : > { %v250_v20 = vpop.permute.xlu0 %249  ;;  %v248_v21 = vpop.permute.xlu1 %247 }
  0xaa   : > { %v279_v22 = vsel %vm277_vm1, %v236_v3, %v250_v20  ;;  %v278_v30 = vsel %vm277_vm1, %v235_v6, %v248_v21 }
  0xad   : > { %v266_v23 = vpop.permute.xlu1 %265 }
  0xb0   : > { %v258_v24 = vpop.permute.xlu0 %257 }
  0xb1   : > { %v282_v25 = vsel %vm280_vm2, %v279_v22, %v258_v24  ;;  %v274_v26 = vpop.permute.xlu1 %273 }
  0xb2   : > { %v285_v28 = vsel %vm283_vm3, %v282_v25, %v266_v23 }
  0xb3   : > { %v288_v29 = vsel %vm286_vm4, %v285_v28, %v274_v26 }
  0xb4   : > { %v256_v27 = vpop.permute.xlu0 %255  ;;  %628 = vmatpush3.msra.mxu0 %v288_v29 }
  0xb5   : > { %629 = vmatprep.subr.mxu0 %v818_v0  ;;  %v281_v31 = vsel %vm280_vm2, %v278_v30, %v256_v27  ;;  %v272_v33 = vpop.permute.xlu1 %271 }
  0xb8   : > { %v264_v32 = vpop.permute.xlu0 %263 }
  0xb9   : > { %v284_v34 = vsel %vm283_vm3, %v281_v31, %v264_v32 }
  0xba   : > { %v287_v36 = vsel %vm286_vm4, %v284_v34, %v272_v33 }
  0xbb   : > { %630 = vmatpush3.msra.mxu0 %v287_v36 }
  0xbc   : > { %632 = vmatmul.mubr.msk.f32.vlgmr.msra.gmra.mxu0 %vm277_vm1, %v289_v35 }
 0x17c   : > { %v359_v38 = vpop.f32.mrf.mxu0 }
 0x17d   : > { %655 = vmatmul.mubr.msk.f32.vlgmr.msra.gmra.mxu1 %vm373_vm5, %v359_v38 }
 0x17e   : > { %v633_v39 = vpop.f32.mrf.mxu0 }
 0x23d   : > { %v443_v40 = vpop.f32.mrf.mxu1 }
 0x23e   : > { %v447_v41 = vmul.f32 %v443_v40, %v443_v40 }
 0x23f   : > { %v656_v42 = vpop.f32.mrf.mxu1 }
 0x240   : > { %454 = vrot.lane.b32.xlu0 %v447_v41, %s824_s22 }
 0x244   : > { %449 = vrot.lane.b32.xlu0 %v443_v40, %s825_s8 }
 0x2b2   : > { %v455_v43 = vpop.permute.xlu0 %454 }
 0x2b3   : > { %v457_v44 = vsub.f32 %v443_v40, %v455_v43 }
 0x2b5   : > { %466 = vrot.lane.b32.xlu1 %v457_v44, %s825_s8 }
 0x2b6   : > { %v450_v45 = vpop.permute.xlu0 %449 }
 0x2b7   : > { %v452_v46 = vmul.f32 %v450_v45, %v443_v40 }
 0x2b9   : > { %459 = vrot.lane.b32.xlu0 %v452_v46, %s826_s10  ;;  %v477_v60 = vmul.f32 2.0, %v452_v46 }
 0x2bb   : > { %v478_v62 = vadd.f32 6.5025, %v477_v60 }
 0x327   : > { %v467_v47 = vpop.permute.xlu1 %466 }
 0x328   : > { %v469_v48 = vadd.f32 %v467_v47, %v457_v44 }
 0x32a   : > { %v470_v49 = vadd.f32 58.5225, %v469_v48 }
 0x32b   : > { %v460_v51 = vpop.permute.xlu0 %459 }
 0x32c   : > { %472 = vrot.lane.b32.xlu1 %v470_v49, %s824_s22  ;;  %v462_v52 = vsub.f32 %v443_v40, %v460_v51 }
 0x32e   : > { %v463_v53 = vmul.f32 2.0, %v462_v52 }
 0x330   : > { %479 = vrot.lane.b32.xlu1 %v447_v41, %s825_s8  ;;  %v464_v54 = vadd.f32 58.5225, %v463_v53 }
 0x39e   : > { %v473_v50 = vpop.permute.xlu1 %472 }
 0x39f   : > { %717 = vrcp.f32 %v473_v50 }
 0x3a2   : > { %v480_v57 = vpop.permute.xlu1 %479 }
 0x3a3   : > { %v482_v58 = vadd.f32 %v480_v57, %v447_v41 }
 0x3a5   : > { %v483_v59 = vadd.f32 6.5025, %v482_v58 }
 0x3a7   : > { %719 = vrcp.f32 %v483_v59 }
 0x3ac   : > { %v718_v55 = vpop.eup %717 }
 0x3ad   : > { %v476_v56 = vmul.f32 %v718_v55, %v464_v54 }
 0x3af   : > { %487 = vrot.lane.b32.xlu0 %v476_v56, %s827_s11 }
 0x3b4   : > { %v720_v61 = vpop.eup %719 }
 0x3b5   : > { %v485_v63 = vmul.f32 %v720_v61, %v478_v62 }
 0x421   : > { %v488_v0 = vpop.permute.xlu0 %487 }
 0x422   : > { %v490_v1 = vmul.f32 %v488_v0, %v485_v63 }
 0x424   : > { %v492_v2 = vsel %vm491_vm6, %v490_v1, 0.0 }
 0x425   : > { %493 = vadd.xlane.f32.xlu1 %v492_v2 }
 0x4ae   : > { %v494_v3 = vpop.xlane.xlu1 %493 }
 0x4af   : > { %v495_v4 = vrot.slane %v494_v3, 4 }
 0x4b1   : > { %v496_v5 = vadd.f32 %v495_v4, %v494_v3 }
 0x4b3   : > { %v497_v6 = vrot.slane %v496_v5, 2 }
 0x4b5   : > { %v498_v7 = vadd.f32 %v497_v6, %v496_v5 }
 0x4b7   : > { %v499_v8 = vrot.slane %v498_v7, 1 }
 0x4b9   : > { %v500_v9 = vadd.f32 %v499_v8, %v498_v7 }
 0x4bb   : > { %657 = vpush %v500_v9 }
 0x4ec   : > { %s658_s26 = spop %657 }
 0x4ed   : > { %s502_s29 = smul.f32 0.027777778, %s658_s26 }
 0x4ef   : > { %v503_v10 = vstv %s502_s29 }
 0x4f0   : > { %504 = vst [vmem:[%s229_s12] sm:$0x1] %v503_v10 }
 0x4f1   : > { %762 = shalt.err (!%p759_p13)
}
 0x4f2   : > { %s763_s22 = scalar_lea.hbm %s1018_s6, 16  ;;  %s767_s10 = scalar_lea.hbm %s1058_s4, 96 }
 0x4f3   : > { %p764_p1 = scmp.ne.s32.totalorder %s1018_s6, %s763_s22  ;;  %p768_p3 = scmp.lt.s32.totalorder %s1018_s6, %s1058_s4 }
 0x4f4   : > { %p769_p6 = scmp.lt.s32.totalorder %s767_s10, %s763_s22 }
 0x4f5   : > { %p765_p0 = pnand %p764_p1, %p1067_p12 }
 0x4f6   : > { %p770_p10 = por %p769_p6, %p768_p3 }
 0x4f7   : > { %p766_p2 = pneg %p765_p0 }
 0x4f9   : > { %p771_p11 = pnand %p770_p10, %p766_p2 }
 0x4fb   : > { %774 = shalt.err (!%p771_p11)
}
 0x4fc   : > { %661 = dma.vmem_to_hbm [thread:$0]  (%p1067_p12), %s519_s23, 16, %s1018_s6, %s506_s7  }
 0x4fd PF: > { %p672_p4 = scmp.ge.s32.totalorder %s813_s18, 2  ;;  %s530_s25 = sand.u32 1, %s801_s15  }
 0x4fe   : > { %p1068_p5 = scmp.ne.s32.totalorder %s1064_s28, 0  ;;  %s531_s26 = scalar_lea.sflag [#allocation4], %s530_s25 }
 0x500   : > { %p668_p7 = pnand %p672_p4, %p1068_p5 }
 0x502   : > { %p669_p8 = pneg %p668_p7 }
 0x504   : > { %796 = dma.done.wait (%p669_p8), %s531_s26, 16  }
 0x505   : > { %798 = vsyncadd (%p669_p8), %s531_s26, 4294967280  ;;  %p17_p9 = scmp.ge.s32.totalorder %s879_s21, 8   ;;  %s1069_s15 = smov %s805_s16 }
 0x506   : > { %s1070_s16 = smov %s809_s17  ;;  %s1071_s17 = smov %s891_s24 }
 0x507   : > { %s1072_s18 = smov %s879_s21  ;;  %19 = sbr.rel (!%p17_p9) target bundleno = 5 (0x5), region = 84 }
 0x50c   :  { %535 = vsyncpa [#allocation3], 1 }
 0x50d   :  { %537 = vsyncpa [#allocation3 + $0x1], 1 }
 0x50e   :  { %538 = vsyncpa [#allocation4], 1 }
 0x50f   :  { %540 = vsyncpa [#allocation4 + $0x1], 1 }

</bundles_post_ra>
